<compile_context>
chip_gen: v7x
topology: tpu7x:2x2x1
jax: 0.10.0
libtpu: 0.0.40
codegen_flags: <defaults>
</compile_context>

<pallas_src>
import jax
import jax.numpy as jnp
from jax.experimental import pallas as pl
from jax.experimental.pallas import tpu as pltpu


def _round_up(x, m):
    return ((x + m - 1) // m) * m


def _ctp_kernel(x_ref, wc_ref, pb_ref, o_ref):
    # x:   (TM, 1152) bf16   row tile of flattened chord segments
    # wc:  (1152, 128) bf16  fused (encoder @ squeezer^T) weight, resident
    # pb:  (TM, 128)  f32    fused bias + positional embedding, resident
    # o:   (TM, 128)  f32
    o_ref[...] = (
        jnp.dot(x_ref[...], wc_ref[...], preferred_element_type=jnp.float32)
        + pb_ref[...]
    )


def ctp_external_encoder(chd, params, tm=256):
    """chd: (bs, 128, 36) float32 -> (bs, 4, 128) float32."""
    bs = chd.shape[0]
    R = bs * 4
    x = chd.reshape(R, 32 * 36).astype(jnp.float32)

    # --- Wrapper-side algebraic fusion (exact while the encoder is linear) ---
    w_sq_t = params["w_sq"].T                                    # (512, 128)
    wc = (params["w_enc"] @ w_sq_t).astype(jnp.bfloat16)         # (1152, 128)
    bc = params["b_enc"] @ w_sq_t + params["b_sq"]               # (128,)
    pos_bias = params["pos_emb"] + bc[None, :]                   # (4, 128) f32

    # --- Row tiling: TM multiple of 8 (also of 4, so the pos pattern repeats
    #     identically inside every tile and a single resident block suffices).
    tm = min(tm, _round_up(R, 8))
    tm = _round_up(tm, 8)
    r_pad = _round_up(R, tm)
    if r_pad != R:
        x = jnp.pad(x, ((0, r_pad - R), (0, 0)))
    x_bf16 = x.astype(jnp.bfloat16)                              # (r_pad, 1152)
    pb_tile = jnp.tile(pos_bias, (tm // 4, 1))                   # (tm, 128) f32

    grid = (r_pad // tm,)
    out = pl.pallas_call(
        _ctp_kernel,
        out_shape=jax.ShapeDtypeStruct((r_pad, 128), jnp.float32),
        grid=grid,
        in_specs=[
            # streamed row tile of x (double-buffered by Pallas)
            pl.BlockSpec((tm, 1152), lambda i: (i, 0)),
            # fused weight: pinned to (0,0) -> loaded once, stays resident
            pl.BlockSpec((1152, 128), lambda i: (0, 0)),
            # fused bias+pos tile: pinned to (0,0) -> resident
            pl.BlockSpec((tm, 128), lambda i: (0, 0)),
        ],
        out_specs=pl.BlockSpec((tm, 128), lambda i: (i, 0)),
        compiler_params=pltpu.CompilerParams(
            dimension_semantics=("parallel",)),
    )(x_bf16, wc, pb_tile)

    return out[:R].reshape(bs, 4, 128)


def init_params(key):
    k_enc_w, k_enc_b, k_sq_w, k_sq_b, k_pos = jax.random.split(key, 5)
    params = {
        # synthetic stand-in for chd_enc8: (32*36) -> 512
        "w_enc": jax.random.normal(k_enc_w, (1152, 512), jnp.float32) * 0.02,
        "b_enc": jax.random.normal(k_enc_b, (512,), jnp.float32) * 0.02,
        # squeezer = nn.Linear(512, 128): weight shape (128, 512) like PyTorch
        "w_sq": jax.random.normal(k_sq_w, (128, 512), jnp.float32) * 0.02,
        "b_sq": jax.random.normal(k_sq_b, (128,), jnp.float32) * 0.02,
        # pos_enc = nn.Embedding(4, 128)
        "pos_emb": jax.random.normal(k_pos, (4, 128), jnp.float32) * 0.02,
    }
    return params


def _reference(chd, params):
    """Un-fused f32 reference matching the original module structure."""
    bs = chd.shape[0]
    x = chd.reshape(bs * 4, 1152)
    z = x @ params["w_enc"] + params["b_enc"]          # stand-in encoder
    z = z.reshape(bs, 4, 512)
    h = z @ params["w_sq"].T + params["b_sq"]          # squeezer
    h = h + params["pos_emb"][None, :, :]              # pos_emb add
    return h


if __name__ == "__main__":
    key = jax.random.PRNGKey(0)
    k_params, k_x = jax.random.split(key)
    params = init_params(k_params)

    bs = 2
    chd = jax.random.normal(k_x, (bs, 128, 36), jnp.float32)   # (bs, 4*32, 36)

    out = ctp_external_encoder(chd, params)
    out = jax.block_until_ready(out)

    ref = _reference(chd, params)
    assert out.shape == (bs, 4, 128), out.shape
    # bf16 inputs / f32 accumulation: relaxed tolerance vs. f32 reference.
    assert jnp.allclose(out, ref, atol=2e-2, rtol=2e-2), (
        "mismatch vs reference, max abs diff = "
        f"{float(jnp.max(jnp.abs(out - ref)))}")

    print("KERNEL_OK")
</pallas_src>

<mosaic_0001>
module attributes {stable_mosaic.version = 11 : i64} {
  func.func @_ctp_kernel(%arg0: i32, %arg1: memref<8x1152xbf16, #tpu.memory_space<vmem>>, %arg2: memref<1152x128xbf16, #tpu.memory_space<vmem>>, %arg3: memref<8x128xf32, #tpu.memory_space<vmem>>, %arg4: memref<8x128xf32, #tpu.memory_space<vmem>>) attributes {dimension_semantics = [#tpu.dimension_semantics<parallel>], iteration_bounds = array<i64: 1>, scalar_prefetch = 0 : i64, scratch_operands = 0 : i64, tpu.core_type = #tpu.core_type<tc>, window_params = [{transform_indices = @transform_0, window_bounds = array<i64: 8, 1152>}, {pipeline_mode = #tpu.pipeline_mode<synchronous>, transform_indices = @transform_1, window_bounds = array<i64: 1152, 128>}, {pipeline_mode = #tpu.pipeline_mode<synchronous>, transform_indices = @transform_2, window_bounds = array<i64: 8, 128>}, {transform_indices = @transform_3, window_bounds = array<i64: 8, 128>}]} {
    %c0 = arith.constant 0 : index
    %c0_0 = arith.constant 0 : index
    %0 = vector.load %arg1[%c0, %c0_0] : memref<8x1152xbf16, #tpu.memory_space<vmem>>, vector<8x1152xbf16>
    %c0_1 = arith.constant 0 : index
    %c0_2 = arith.constant 0 : index
    %1 = vector.load %arg2[%c0_1, %c0_2] : memref<1152x128xbf16, #tpu.memory_space<vmem>>, vector<1152x128xbf16>
    %cst = arith.constant dense<0.000000e+00> : vector<8x128xf32>
    %2 = tpu.matmul %0, %1, %cst {dimension_numbers = #tpu.dot_dimension_numbers<[1], [0], [0], [1], [0, 0, 1, 1], [], []>} : vector<8x1152xbf16>, vector<1152x128xbf16>, vector<8x128xf32> -> vector<8x128xf32>
    %c0_3 = arith.constant 0 : index
    %c0_4 = arith.constant 0 : index
    %3 = vector.load %arg3[%c0_3, %c0_4] : memref<8x128xf32, #tpu.memory_space<vmem>>, vector<8x128xf32>
    %4 = arith.addf %2, %3 : vector<8x128xf32>
    %c0_5 = arith.constant 0 : index
    %c0_6 = arith.constant 0 : index
    %5 = vector.load %arg4[%c0_5, %c0_6] : memref<8x128xf32, #tpu.memory_space<vmem>>, vector<8x128xf32>
    tpu.vector_store %arg4[%c0_5, %c0_6], %4 {strides = array<i32>} : memref<8x128xf32, #tpu.memory_space<vmem>>, vector<8x128xf32>,
    return
  }
  func.func @transform_0(%arg0: i32) -> (i32, i32) {
    %c0_i32 = arith.constant 0 : i32
    %c0_i32_0 = arith.constant 0 : i32
    return %arg0, %c0_i32 : i32, i32
  }
  func.func @transform_1(%arg0: i32) -> (i32, i32) {
    %c0_i32 = arith.constant 0 : i32
    %c0_i32_0 = arith.constant 0 : i32
    %c0_i32_1 = arith.constant 0 : i32
    return %c0_i32, %c0_i32_0 : i32, i32
  }
  func.func @transform_2(%arg0: i32) -> (i32, i32) {
    %c0_i32 = arith.constant 0 : i32
    %c0_i32_0 = arith.constant 0 : i32
    %c0_i32_1 = arith.constant 0 : i32
    return %c0_i32, %c0_i32_0 : i32, i32
  }
  func.func @transform_3(%arg0: i32) -> (i32, i32) {
    %c0_i32 = arith.constant 0 : i32
    %c0_i32_0 = arith.constant 0 : i32
    return %arg0, %c0_i32 : i32, i32
  }
}

</mosaic_0001>

<bundles_post_ra>
// kernel: tpu_custom_call.1
= control target key start
LH: loop header
LB: loop body
LE: loop exit
PB: predicated region body
PF: predicated region fallthrough
CT: control target
= control target key end

     0   :  { %8 = vsyncpa [#allocation3], 0  ;;  %s1341_s0 = inlined_call_operand.hbm [shape: bf16[8,1152], index: 0, kind: input, shape index: {}]   ;;  %s1342_s1 = inlined_call_operand.hbm [shape: bf16[1152,128], index: 1, kind: input, shape index: {}]   ;;  %s1343_s2 = inlined_call_operand.hbm [shape: f32[8,128], index: 2, kind: input, shape index: {}]   ;;  %s1344_s3 = inlined_call_operand.hbm [shape: f32[8,128], index: 3, kind: output, shape index: {}]  }
   0x1   :  { %9 = vsyncpa [#allocation6], 0 }
   0x2   :  { %10 = vsyncpa [#allocation4], 0  ;;  %s1265_s12 = smov [#allocation5]   ;;  %s1171_s16 = scalar_lea.hbm %s1342_s1, 9216 }
   0x3   :  { %s26_s13 = sshll.u32 %s1265_s12, 4  ;;  %p1172_p0 = scmp.ne.s32.totalorder %s1342_s1, %s1171_s16  ;;  %s27_s13 = int_to_ptr.vmem [resolvable:$true] %s26_s13 }
   0x4   :  { %p1175_p1 = scmp.lt.u32.totalorder %s1171_s16, %s1342_s1 }
   0x6   :  { %p1177_p2 = pnand %p1175_p1, %p1172_p0 }
   0x8   :  { %1180 = shalt.err (!%p1177_p2)
}
   0x9   :  { %s1181_s21 = scalar_lea.vmem %s27_s13, 9216  ;;  %p1186_p4 = scmp.lt.s32.totalorder %s27_s13, %s27_s13 }
   0xa   :  { %p1182_p3 = scmp.ne.s32.totalorder %s27_s13, %s1181_s21  ;;  %p1187_p5 = scmp.lt.s32.totalorder %s1181_s21, %s1181_s21 }
   0xc   :  { %p1188_p6 = por %p1187_p5, %p1186_p4 }
   0xe   :  { %p1189_p7 = pnand %p1188_p6, %p1182_p3 }
  0x10   :  { %1192 = shalt.err (!%p1189_p7)
}
  0x11   :  { %s1266_s22 = smov 64   ;;  %s1267_s23 = smov 4  }
  0x12   :  { %32 = dma.hbm_to_vmem [thread:$0]  %s1342_s1, 9216, %s27_s13, [#allocation6], %s1266_s22, %s1266_s22, %s1267_s23  }
  0x13   :  { %s1268_s26 = smov [#allocation2]   ;;  %s1269_s28 = smov [#allocation7]  }
  0x14   :  { %s17_s27 = sshll.u32 %s1268_s26, 4  ;;  %s39_s29 = sshll.u32 %s1269_s28, 4  ;;  %s18_s27 = int_to_ptr.vmem [resolvable:$true] %s17_s27  ;;  %s40_s29 = int_to_ptr.vmem [resolvable:$true] %s39_s29 }
  0x15   :  { %s1193_s5 = scalar_lea.hbm %s1341_s0, 576 }
  0x16   :  { %p1194_p8 = scmp.ne.s32.totalorder %s1341_s0, %s1193_s5  ;;  %p1197_p9 = scmp.lt.u32.totalorder %s1193_s5, %s1341_s0 }
  0x18   :  { %p1199_p10 = pnand %p1197_p9, %p1194_p8 }
  0x1a   :  { %1202 = shalt.err (!%p1199_p10)
}
  0x1b   :  { %s1203_s1 = scalar_lea.vmem %s18_s27, 576  ;;  %p1208_p12 = scmp.lt.s32.totalorder %s18_s27, %s18_s27 }
  0x1c   :  { %p1204_p11 = scmp.ne.s32.totalorder %s18_s27, %s1203_s1  ;;  %p1209_p13 = scmp.lt.s32.totalorder %s1203_s1, %s1203_s1 }
  0x1e   :  { %p1210_p0 = por %p1209_p13, %p1208_p12 }
  0x20   :  { %p1211_p1 = pnand %p1210_p0, %p1204_p11 }
  0x22   :  { %1214 = shalt.err (!%p1211_p1)
}
  0x23   :  { %20 = dma.hbm_to_vmem [thread:$0]  %s1341_s0, 576, %s18_s27, [#allocation3]  }
  0x24   :  { %s1215_s14 = scalar_lea.hbm %s1343_s2, 128 }
  0x25   :  { %p1216_p2 = scmp.ne.s32.totalorder %s1343_s2, %s1215_s14  ;;  %p1219_p3 = scmp.lt.u32.totalorder %s1215_s14, %s1343_s2 }
  0x27   :  { %p1221_p4 = pnand %p1219_p3, %p1216_p2 }
  0x29   :  { %1224 = shalt.err (!%p1221_p4)
}
  0x2a   :  { %s1225_s19 = scalar_lea.vmem %s40_s29, 128  ;;  %p1230_p6 = scmp.lt.s32.totalorder %s40_s29, %s40_s29 }
  0x2b   :  { %p1226_p5 = scmp.ne.s32.totalorder %s40_s29, %s1225_s19  ;;  %p1231_p7 = scmp.lt.s32.totalorder %s1225_s19, %s1225_s19 }
  0x2d   :  { %p1232_p8 = por %p1231_p7, %p1230_p6 }
  0x2f   :  { %p1233_p9 = pnand %p1232_p8, %p1226_p5 }
  0x31   :  { %1236 = shalt.err (!%p1233_p9)
}
  0x32   :  { %42 = dma.hbm_to_vmem [thread:$0]  %s1343_s2, 128, %s40_s29, [#allocation6]  }
  0x33   :  { %1259 = dma.done.wait [#allocation3], 576  }
  0x34   :  { %1260 = vsyncadd [#allocation3], 4294966720 }
  0x35   :  { %1261 = dma.done.wait [#allocation6], 9344  }
  0x36   :  { %1262 = vsyncadd [#allocation6], 4294957952  ;;  %v1090_v0 = vld [vmem:[#allocation5 + $0x40] sm:$0xff]   ;;  %v1094_v4 = vld [vmem:[#allocation5 + $0x48] sm:$0xff]   ;;  %vm1271_vm0 = vmmov 0   ;;  %s1272_s2 = smov [#allocation8]  }
  0x37   :  { %v1091_v1 = vld [vmem:[#allocation5] sm:$0xff]   ;;  %965 = vmatprep.subr.bf16.mxu0 %v1090_v0  ;;  %v1095_v5 = vld [vmem:[#allocation5 + $0x8] sm:$0xff]   ;;  %v1098_v8 = vld [vmem:[#allocation5 + $0x50] sm:$0xff]   ;;  %s874_s21 = sshll.u32 %s1272_s2, 4  ;;  %s875_s21 = int_to_ptr.vmem [resolvable:$true] %s874_s21 }
  0x38   :  { %v1092_v2 = vld [vmem:[#allocation5 + $0xc0] sm:$0xff]   ;;  %966 = vmatpush3.bf16.msra.mxu0 %v1091_v1  ;;  %v1096_v6 = vld [vmem:[#allocation5 + $0xc8] sm:$0xff]   ;;  %v1099_v9 = vld [vmem:[#allocation5 + $0x10] sm:$0xff]   ;;  %s1237_s22 = scalar_lea.vmem %s875_s21, 128  ;;  %p1242_p11 = scmp.lt.s32.totalorder %s875_s21, %s875_s21 }
  0x39   :  { %v1093_v3 = vld [vmem:[#allocation5 + $0x80] sm:$0xff]   ;;  %987 = vmatprep.subr.bf16.mxu1 %v1092_v2  ;;  %967 = vmatprep.subr.bf16.mxu0 %v1094_v4  ;;  %v1097_v7 = vld [vmem:[#allocation5 + $0x88] sm:$0xff]   ;;  %v1100_v10 = vld [vmem:[#allocation5 + $0xd0] sm:$0xff]   ;;  %p1238_p10 = scmp.ne.s32.totalorder %s875_s21, %s1237_s22  ;;  %p1243_p12 = scmp.lt.s32.totalorder %s1237_s22, %s1237_s22 }
  0x3a   :  { %988 = vmatpush3.bf16.msra.mxu1 %v1093_v3  ;;  %v1101_v11 = vld [vmem:[#allocation5 + $0x90] sm:$0xff]   ;;  %v1102_v12 = vld [vmem:[#allocation5 + $0x58] sm:$0xff]   ;;  %v1106_v16 = vld [vmem:[#allocation5 + $0x60] sm:$0xff]  }
  0x3b   :  { %989 = vmatprep.subr.bf16.mxu1 %v1096_v6  ;;  %v1103_v13 = vld [vmem:[#allocation5 + $0x18] sm:$0xff]   ;;  %v1107_v17 = vld [vmem:[#allocation5 + $0x20] sm:$0xff]   ;;  %v1110_v20 = vld [vmem:[#allocation5 + $0x68] sm:$0xff]   ;;  %p1244_p13 = por %p1243_p12, %p1242_p11 }
  0x3c   :  { %968 = vmatpush3.bf16.msra.mxu0 %v1095_v5  ;;  %v1104_v14 = vld [vmem:[#allocation5 + $0xd8] sm:$0xff]   ;;  %v1108_v18 = vld [vmem:[#allocation5 + $0xe0] sm:$0xff]   ;;  %v1111_v21 = vld [vmem:[#allocation5 + $0x28] sm:$0xff]  }
  0x3d   :  { %969 = vmatprep.subr.bf16.mxu0 %v1098_v8  ;;  %v1105_v15 = vld [vmem:[#allocation5 + $0x98] sm:$0xff]   ;;  %v1109_v19 = vld [vmem:[#allocation5 + $0xa0] sm:$0xff]   ;;  %v1112_v22 = vld [vmem:[#allocation5 + $0xe8] sm:$0xff]   ;;  %p1245_p0 = pnand %p1244_p13, %p1238_p10 }
  0x3e   :  { %990 = vmatpush3.bf16.msra.mxu1 %v1097_v7  ;;  %v1113_v23 = vld [vmem:[#allocation5 + $0xa8] sm:$0xff]   ;;  %v1114_v24 = vld [vmem:[#allocation5 + $0x70] sm:$0xff]   ;;  %v1118_v28 = vld [vmem:[#allocation5 + $0x78] sm:$0xff]  }
  0x3f   :  { %991 = vmatprep.subr.bf16.mxu1 %v1100_v10  ;;  %v1115_v25 = vld [vmem:[#allocation5 + $0x30] sm:$0xff]   ;;  %v1119_v29 = vld [vmem:[#allocation5 + $0x38] sm:$0xff]   ;;  %v1124_v35 = vld [vmem:[#allocation5 + $0x140] sm:$0xff]  }
  0x40   :  { %970 = vmatpush3.bf16.msra.mxu0 %v1099_v9  ;;  %v1116_v26 = vld [vmem:[#allocation5 + $0xf0] sm:$0xff]   ;;  %v1120_v30 = vld [vmem:[#allocation5 + $0xf8] sm:$0xff]   ;;  %v54_v36 = vld [vmem:[#allocation2 + $0x8] sm:$0xff]  ;;  %v1270_v9 = vmov 0.0  }
  0x41   :  { %971 = vmatprep.subr.bf16.mxu0 %v1102_v12  ;;  %v1117_v27 = vld [vmem:[#allocation5 + $0xb0] sm:$0xff]   ;;  %v53_v31 = vld [vmem:[#allocation2] sm:$0xff]  ;;  %v886_v37 = vcombine.low %v54_v36, %v54_v36  ;;  %v887_v38 = vcombine.high %v54_v36, %v54_v36  ;;  %v1130_v42 = vld [vmem:[#allocation5 + $0x148] sm:$0xff]  }
  0x42   :  { %992 = vmatpush3.bf16.msra.mxu1 %v1101_v11  ;;  %v884_v32 = vcombine.low %v53_v31, %v53_v31  ;;  %v885_v33 = vcombine.high %v53_v31, %v53_v31  ;;  %v1123_v34 = vld [vmem:[#allocation5 + $0xb8] sm:$0xff]   ;;  %v1127_v39 = vld [vmem:[#allocation5 + $0x100] sm:$0xff]   ;;  %v1131_v43 = vld [vmem:[#allocation5 + $0x108] sm:$0xff]  }
  0x43   :  { %993 = vmatprep.subr.bf16.mxu1 %v1104_v14  ;;  %v1128_v40 = vld [vmem:[#allocation5 + $0x1c0] sm:$0xff]   ;;  %739 = vmatprep.mubr.bf16.mxu1 %v887_v38  ;;  %v1132_v44 = vld [vmem:[#allocation5 + $0x1c8] sm:$0xff]   ;;  %v1134_v46 = vld [vmem:[#allocation5 + $0x150] sm:$0xff]  }
  0x44   :  { %972 = vmatpush3.bf16.msra.mxu0 %v1103_v13  ;;  %699 = vmatprep.mubr.bf16.mxu0 %v885_v33  ;;  %v1129_v41 = vld [vmem:[#allocation5 + $0x180] sm:$0xff]   ;;  %v1133_v45 = vld [vmem:[#allocation5 + $0x188] sm:$0xff]   ;;  %v1135_v47 = vld [vmem:[#allocation5 + $0x110] sm:$0xff]  }
  0x45   :  { %973 = vmatprep.subr.bf16.mxu0 %v1106_v16  ;;  %v1136_v48 = vld [vmem:[#allocation5 + $0x1d0] sm:$0xff]   ;;  %v1138_v50 = vld [vmem:[#allocation5 + $0x158] sm:$0xff]   ;;  %v1142_v54 = vld [vmem:[#allocation5 + $0x160] sm:$0xff]  }
  0x46   :  { %994 = vmatpush3.bf16.msra.mxu1 %v1105_v15  ;;  %v1137_v49 = vld [vmem:[#allocation5 + $0x190] sm:$0xff]   ;;  %v1139_v51 = vld [vmem:[#allocation5 + $0x118] sm:$0xff]   ;;  %v1143_v55 = vld [vmem:[#allocation5 + $0x120] sm:$0xff]  }
  0x47   :  { %995 = vmatprep.subr.bf16.mxu1 %v1108_v18  ;;  %v1140_v52 = vld [vmem:[#allocation5 + $0x1d8] sm:$0xff]   ;;  %v1144_v56 = vld [vmem:[#allocation5 + $0x1e0] sm:$0xff]   ;;  %v1146_v58 = vld [vmem:[#allocation5 + $0x168] sm:$0xff]  }
  0x48   :  { %974 = vmatpush3.bf16.msra.mxu0 %v1107_v17  ;;  %v1141_v53 = vld [vmem:[#allocation5 + $0x198] sm:$0xff]   ;;  %v1145_v57 = vld [vmem:[#allocation5 + $0x1a0] sm:$0xff]   ;;  %v1147_v59 = vld [vmem:[#allocation5 + $0x128] sm:$0xff]  }
  0x49   :  { %975 = vmatprep.subr.bf16.mxu0 %v1110_v20  ;;  %v1148_v60 = vld [vmem:[#allocation5 + $0x1e8] sm:$0xff]   ;;  %v1150_v62 = vld [vmem:[#allocation5 + $0x170] sm:$0xff]   ;;  %v1154_v2 = vld [vmem:[#allocation5 + $0x178] sm:$0xff]  }
  0x4a   :  { %996 = vmatpush3.bf16.msra.mxu1 %v1109_v19  ;;  %v1149_v61 = vld [vmem:[#allocation5 + $0x1a8] sm:$0xff]   ;;  %v1151_v63 = vld [vmem:[#allocation5 + $0x130] sm:$0xff]   ;;  %v1155_v3 = vld [vmem:[#allocation5 + $0x138] sm:$0xff]  }
  0x4b   :  { %997 = vmatprep.subr.bf16.mxu1 %v1112_v22  ;;  %v1152_v0 = vld [vmem:[#allocation5 + $0x1f0] sm:$0xff]   ;;  %v1156_v4 = vld [vmem:[#allocation5 + $0x1f8] sm:$0xff]   ;;  %v1162_v13 = vld [vmem:[#allocation5 + $0x200] sm:$0xff]  }
  0x4c   :  { %976 = vmatpush3.bf16.msra.mxu0 %v1111_v21  ;;  %v1153_v1 = vld [vmem:[#allocation5 + $0x1b0] sm:$0xff]   ;;  %v1159_v8 = vld [vmem:[#allocation5 + $0x1b8] sm:$0xff]   ;;  %v1163_v14 = vld [vmem:[#allocation5 + $0x208] sm:$0xff]  }
  0x4d   :  { %977 = vmatprep.subr.bf16.mxu0 %v1114_v24  ;;  %v55_v5 = vld [vmem:[#allocation2 + $0x10] sm:$0xff]  ;;  %v56_v10 = vld [vmem:[#allocation2 + $0x18] sm:$0xff]  ;;  %v1166_v17 = vld [vmem:[#allocation5 + $0x220] sm:$0xff]  }
  0x4e   :  { %998 = vmatpush3.bf16.msra.mxu1 %v1113_v23  ;;  %v888_v6 = vcombine.low %v55_v5, %v55_v5  ;;  %v889_v7 = vcombine.high %v55_v5, %v55_v5  ;;  %v890_v11 = vcombine.low %v56_v10, %v56_v10  ;;  %v891_v12 = vcombine.high %v56_v10, %v56_v10  ;;  %v1164_v15 = vld [vmem:[#allocation5 + $0x210] sm:$0xff]   ;;  %v1165_v16 = vld [vmem:[#allocation5 + $0x218] sm:$0xff]   ;;  %v1167_v18 = vld [vmem:[#allocation5 + $0x228] sm:$0xff]  }
  0x4f   :  { %999 = vmatprep.subr.bf16.mxu1 %v1116_v26  ;;  %v1168_v19 = vld [vmem:[#allocation5 + $0x230] sm:$0xff]   ;;  %v1169_v20 = vld [vmem:[#allocation5 + $0x238] sm:$0xff]   ;;  %v202_v23 = vld [vmem:[#allocation7] sm:$0xff] }
  0x50   :  { %978 = vmatpush3.bf16.msra.mxu0 %v1115_v25  ;;  %v1170_v21 = vld [vmem:[#allocation2 + $0x20] ss:$0 sps:$4 sm:$0xff]  }
  0x51   :  { %979 = vmatprep.subr.bf16.mxu0 %v1118_v28 }
  0x52   :  { %1000 = vmatpush3.bf16.msra.mxu1 %v1117_v27 }
  0x53   :  { %1001 = vmatprep.subr.bf16.mxu1 %v1120_v30 }
  0x54   :  { %980 = vmatpush3.bf16.msra.mxu0 %v1119_v29 }
  0x55   :  { %1009 = vmatprep.subr.bf16.mxu0 %v1124_v35 }
  0x56   :  { %1002 = vmatpush3.bf16.msra.mxu1 %v1123_v34 }
  0x57   :  { %700 = vmatmul.mubr.bf16.vlgmr.msra.gmra.mrb[0].mxu0 %v884_v32  ;;  %1031 = vmatprep.subr.bf16.mxu1 %v1128_v40 }
  0x58   :  { %1010 = vmatpush3.bf16.msra.mxu0 %v1127_v39  ;;  %779 = vmatprep.mubr.bf16.mxu0 %v889_v7 }
  0x59   :  { %740 = vmatmul.mubr.bf16.vlgmr.msra.gmra.mrb[0].mxu1 %v886_v37  ;;  %1011 = vmatprep.subr.bf16.mxu0 %v1130_v42 }
  0x5a   :  { %1032 = vmatpush3.bf16.msra.mxu1 %v1129_v41  ;;  %819 = vmatprep.mubr.bf16.mxu1 %v891_v12 }
  0x5b   :  { %1033 = vmatprep.subr.bf16.mxu1 %v1132_v44 }
  0x5c   :  { %1012 = vmatpush3.bf16.msra.mxu0 %v1131_v43 }
  0x5d   :  { %1013 = vmatprep.subr.bf16.mxu0 %v1134_v46 }
  0x5e   :  { %1034 = vmatpush3.bf16.msra.mxu1 %v1133_v45 }
  0x5f   :  { %1035 = vmatprep.subr.bf16.mxu1 %v1136_v48 }
  0x60   :  { %1014 = vmatpush3.bf16.msra.mxu0 %v1135_v47 }
  0x61   :  { %1015 = vmatprep.subr.bf16.mxu0 %v1138_v50 }
  0x62   :  { %1036 = vmatpush3.bf16.msra.mxu1 %v1137_v49 }
  0x63   :  { %1037 = vmatprep.subr.bf16.mxu1 %v1140_v52 }
  0x64   :  { %1016 = vmatpush3.bf16.msra.mxu0 %v1139_v51 }
  0x65   :  { %1017 = vmatprep.subr.bf16.mxu0 %v1142_v54 }
  0x66   :  { %1038 = vmatpush3.bf16.msra.mxu1 %v1141_v53 }
  0x67   :  { %1039 = vmatprep.subr.bf16.mxu1 %v1144_v56 }
  0x68   :  { %1018 = vmatpush3.bf16.msra.mxu0 %v1143_v55 }
  0x69   :  { %1019 = vmatprep.subr.bf16.mxu0 %v1146_v58 }
  0x6a   :  { %1040 = vmatpush3.bf16.msra.mxu1 %v1145_v57 }
  0x6b   :  { %1041 = vmatprep.subr.bf16.mxu1 %v1148_v60 }
  0x6c   :  { %1020 = vmatpush3.bf16.msra.mxu0 %v1147_v59 }
  0x6d   :  { %1021 = vmatprep.subr.bf16.mxu0 %v1150_v62 }
  0x6e   :  { %1042 = vmatpush3.bf16.msra.mxu1 %v1149_v61 }
  0x6f   :  { %1043 = vmatprep.subr.bf16.mxu1 %v1152_v0 }
  0x70   :  { %1022 = vmatpush3.bf16.msra.mxu0 %v1151_v63 }
  0x71   :  { %1023 = vmatprep.subr.bf16.mxu0 %v1154_v2 }
  0x72   :  { %1044 = vmatpush3.bf16.msra.mxu1 %v1153_v1 }
  0x73   :  { %1045 = vmatprep.subr.bf16.mxu1 %v1156_v4 }
  0x74   :  { %1024 = vmatpush3.bf16.msra.mxu0 %v1155_v3 }
  0x75   :  { %1062 = vmatprep.subr.bf16.mxu0 %v1270_v9 }
  0x76   :  { %1046 = vmatpush3.bf16.msra.mxu1 %v1159_v8 }
  0x77   :  { %780 = vmatmul.mubr.bf16.vlgmr.msra.gmra.mrb[4].mxu0 %v888_v6 }
  0x78   :  { %1063 = vmatpush3.bf16.msra.mxu0 %v1162_v13  ;;  %1078 = vmatprep.mubr.msk.bf16.mxu0 %vm1271_vm0, %v1270_v9 }
  0x79   :  { %820 = vmatmul.mubr.bf16.vlgmr.msra.gmra.mrb[4].mxu1 %v890_v11  ;;  %1064 = vmatprep.subr.bf16.mxu0 %v1270_v9 }
  0x7c   :  { %1065 = vmatpush3.bf16.msra.mxu0 %v1163_v14 }
  0x7d   :  { %1066 = vmatprep.subr.bf16.mxu0 %v1270_v9 }
  0x80   :  { %1067 = vmatpush3.bf16.msra.mxu0 %v1164_v15 }
  0x81   :  { %1068 = vmatprep.subr.bf16.mxu0 %v1270_v9 }
  0x84   :  { %1069 = vmatpush3.bf16.msra.mxu0 %v1165_v16 }
  0x85   :  { %1070 = vmatprep.subr.bf16.mxu0 %v1270_v9 }
  0x88   :  { %1071 = vmatpush3.bf16.msra.mxu0 %v1166_v17 }
  0x89   :  { %1072 = vmatprep.subr.bf16.mxu0 %v1270_v9 }
  0x8c   :  { %1073 = vmatpush3.bf16.msra.mxu0 %v1167_v18 }
  0x8d   :  { %1074 = vmatprep.subr.bf16.mxu0 %v1270_v9 }
  0x90   :  { %1075 = vmatpush3.bf16.msra.mxu0 %v1168_v19 }
  0x91   :  { %1076 = vmatprep.subr.bf16.mxu0 %v1270_v9 }
  0x94   :  { %1077 = vmatpush3.bf16.msra.mxu0 %v1169_v20 }
  0x97   :  { %1079 = vmatmul.mubr.bf16.vlgmr.msra.gmra.mrb[8].mxu0 %v1170_v21 }
 0x12a   :  { %v981_v22 = vpop.f32.mrb[0].mxu0 }
 0x12b   :  { %v982_v24 = vpop.f32.mrb[1].mxu0 }
 0x12c   :  { %v983_v25 = vadd.f32 %v982_v24, %v981_v22  ;;  %v984_v26 = vpop.f32.mrb[2].mxu0  ;;  %v1003_v27 = vpop.f32.mrb[0].mxu1 }
 0x12d   :  { %v985_v28 = vpop.f32.mrb[3].mxu0  ;;  %v1004_v29 = vpop.f32.mrb[1].mxu1 }
 0x12e   :  { %v702_v30 = vadd.f32 %v983_v25, %v202_v23  ;;  %v1005_v31 = vadd.f32 %v1004_v29, %v1003_v27  ;;  %v1006_v32 = vpop.f32.mrb[2].mxu1 }
 0x12f   :  { %v1007_v33 = vpop.f32.mrb[3].mxu1 }
 0x130   :  { %v742_v34 = vadd.f32 %v1005_v31, %v702_v30 }
 0x14a   :  { %v1025_v35 = vpop.f32.mrb[4].mxu0 }
 0x14b   :  { %v1026_v36 = vpop.f32.mrb[5].mxu0 }
 0x14c   :  { %v1027_v37 = vadd.f32 %v1026_v36, %v1025_v35  ;;  %v1028_v38 = vpop.f32.mrb[6].mxu0  ;;  %v1047_v39 = vpop.f32.mrb[4].mxu1 }
 0x14d   :  { %v1029_v40 = vpop.f32.mrb[7].mxu0  ;;  %v1048_v41 = vpop.f32.mrb[5].mxu1 }
 0x14e   :  { %v782_v42 = vadd.f32 %v1027_v37, %v742_v34  ;;  %v1049_v43 = vadd.f32 %v1048_v41, %v1047_v39  ;;  %v1050_v44 = vpop.f32.mrb[6].mxu1 }
 0x14f   :  { %v1051_v45 = vpop.f32.mrb[7].mxu1 }
 0x150   :  { %v822_v46 = vadd.f32 %v1049_v43, %v782_v42 }
 0x16a   :  { %v861_v47 = vpop.f32.mrb[8].mxu0 }
 0x16b   :  { %v862_v48 = vadd.f32 %v861_v47, %v822_v46  ;;  %v1080_v49 = vpop.f32.mrb[9].mxu0 }
 0x16c   :  { %v864_v50 = vpop.f32.mrb[10].mxu0 }
 0x16d   :  { %867 = vst [vmem:[#allocation8] sm:$0xff] %v862_v48  ;;  %v1081_v51 = vpop.f32.mrb[11].mxu0 }
 0x16e   :  { %1248 = shalt.err (!%p1245_p0)
}
 0x16f   :  { %s1249_s25 = scalar_lea.hbm %s1344_s3, 128 }
 0x170   :  { %p1250_p1 = scmp.ne.s32.totalorder %s1344_s3, %s1249_s25  ;;  %p1253_p2 = scmp.lt.u32.totalorder %s1249_s25, %s1344_s3 }
 0x172   :  { %p1255_p3 = pnand %p1253_p2, %p1250_p1 }
 0x174   :  { %1258 = shalt.err (!%p1255_p3)
}
 0x175   :  { %877 = dma.vmem_to_hbm [thread:$0]  %s875_s21, 128, %s1344_s3, [#allocation4]  }
 0x176   :  { %1263 = dma.done.wait [#allocation4], 128  }
 0x177   :  { %1264 = vsyncadd [#allocation4], 4294967168 }
 0x178   :  { %881 = vsyncpa [#allocation3], 1 }
 0x179   :  { %882 = vsyncpa [#allocation6], 1 }
 0x17a   :  { %883 = vsyncpa [#allocation4], 1 }

</bundles_post_ra>
